<compile_context>
chip_gen: v6e
topology: v6e:2x2x1
jax: 0.10.0
libtpu: 0.0.40
codegen_flags: <defaults>
</compile_context>

<pallas_src>
import functools

import jax
import jax.numpy as jnp
from jax.experimental import pallas as pl
from jax.experimental.pallas import tpu as pltpu

LANE = 128       # vreg lane width
SUBLANE = 8      # vreg sublane count (f32)

# 128 is MXU-native on v5e and always legal; for large graphs on v6e/v7x bump
# to 256 to feed the 2x256^2 MXU.
DEFAULT_TILE = 128

# Explicit scoped-VMEM budget: tiny for these tiles, well under v7x's 64 MiB.
VMEM_LIMIT_BYTES = 32 * 1024 * 1024


def _round_up(x, m):
    return ((x + m - 1) // m) * m


def _pad_to(arr, target_shape):
    pads = [(0, t - s) for s, t in zip(arr.shape, target_shape)]
    if all(p == (0, 0) for p in pads):
        return arr
    return jnp.pad(arr, pads)


# --------------------------------------------------------------------------
# Kernels
# --------------------------------------------------------------------------
def _feature_kernel(x_ref, w_ref, o_ref):
    # h = X @ W   (one row-tile of X per grid step; W resident in VMEM)
    o_ref[...] = jnp.dot(x_ref[...], w_ref[...],
                         preferred_element_type=jnp.float32).astype(o_ref.dtype)


def _aggregate_kernel(a_ref, h_ref, b_ref, o_ref, acc_ref, *, apply_relu):
    # o = A @ h + b (optionally ReLU), accumulated over k = A-column tiles.
    k = pl.program_id(1)

    @pl.when(k == 0)
    def _():
        acc_ref[...] = jnp.zeros_like(acc_ref)

    acc_ref[...] += jnp.dot(a_ref[...], h_ref[...],
                            preferred_element_type=jnp.float32)

    @pl.when(k == pl.num_programs(1) - 1)
    def _():
        r = acc_ref[...] + b_ref[...]
        if apply_relu:
            r = jnp.maximum(r, 0.0)
        o_ref[...] = r.astype(o_ref.dtype)


# --------------------------------------------------------------------------
# Pallas-call wrappers
# --------------------------------------------------------------------------
def _feature_transform(x, w, *, tile, out_dtype):
    n_pad, c = x.shape
    h = w.shape[1]
    flops = 2 * n_pad * c * h
    bytes_accessed = (x.size * x.dtype.itemsize + w.size * w.dtype.itemsize
                      + n_pad * h * jnp.dtype(out_dtype).itemsize)
    return pl.pallas_call(
        _feature_kernel,
        out_shape=jax.ShapeDtypeStruct((n_pad, h), out_dtype),
        grid_spec=pltpu.PrefetchScalarGridSpec(
            num_scalar_prefetch=0,
            grid=(n_pad // tile,),
            in_specs=[pl.BlockSpec((tile, c), lambda i: (i, 0)),
                      pl.BlockSpec((c, h), lambda i: (0, 0))],
            out_specs=pl.BlockSpec((tile, h), lambda i: (i, 0)),
        ),
        compiler_params=pltpu.CompilerParams(
            dimension_semantics=("parallel",),
            vmem_limit_bytes=VMEM_LIMIT_BYTES),
        cost_estimate=pl.CostEstimate(flops=flops, transcendentals=0,
                                      bytes_accessed=bytes_accessed),
    )(x, w)


def _aggregate(a, h, b, *, tile, apply_relu, out_dtype):
    n_pad = a.shape[0]
    hd = h.shape[1]
    flops = 2 * n_pad * n_pad * hd
    bytes_accessed = (a.size * a.dtype.itemsize + h.size * h.dtype.itemsize
                      + n_pad * hd * jnp.dtype(out_dtype).itemsize)
    kernel = functools.partial(_aggregate_kernel, apply_relu=apply_relu)
    return pl.pallas_call(
        kernel,
        out_shape=jax.ShapeDtypeStruct((n_pad, hd), out_dtype),
        grid_spec=pltpu.PrefetchScalarGridSpec(
            num_scalar_prefetch=0,
            grid=(n_pad // tile, n_pad // tile),       # (row tiles, reduction)
            in_specs=[pl.BlockSpec((tile, tile), lambda i, k: (i, k)),
                      pl.BlockSpec((tile, hd), lambda i, k: (k, 0)),
                      pl.BlockSpec((1, hd), lambda i, k: (0, 0))],
            out_specs=pl.BlockSpec((tile, hd), lambda i, k: (i, 0)),
            scratch_shapes=[pltpu.VMEM((tile, hd), jnp.float32)],
        ),
        compiler_params=pltpu.CompilerParams(
            dimension_semantics=("parallel", "arbitrary"),
            vmem_limit_bytes=VMEM_LIMIT_BYTES),
        cost_estimate=pl.CostEstimate(flops=flops, transcendentals=0,
                                      bytes_accessed=bytes_accessed),
    )(a, h, b)


# --------------------------------------------------------------------------
# Net forward
# --------------------------------------------------------------------------
def gcn_net_forward(a_hat, x, params, *, matmul_dtype=jnp.bfloat16,
                    tile=DEFAULT_TILE):
    """3-layer GCN forward via tiled Pallas kernels.  Returns [N, hidden] f32."""
    (w1, b1), (w2, b2), (w3, b3) = params
    n, c_in = x.shape
    hidden = w3.shape[1]

    h_pad = _round_up(hidden, LANE)       # lane-dense hidden dim
    c_pad = _round_up(c_in, SUBLANE)
    n_pad = _round_up(n, tile)

    a_p = _pad_to(a_hat, (n_pad, n_pad)).astype(matmul_dtype)
    x_p = _pad_to(x, (n_pad, c_pad)).astype(matmul_dtype)
    w1p = _pad_to(w1, (c_pad, h_pad)).astype(matmul_dtype)
    w2p = _pad_to(w2, (h_pad, h_pad)).astype(matmul_dtype)
    w3p = _pad_to(w3, (h_pad, h_pad)).astype(matmul_dtype)
    b1p = _pad_to(b1, (1, h_pad)).astype(jnp.float32)
    b2p = _pad_to(b2, (1, h_pad)).astype(jnp.float32)
    b3p = _pad_to(b3, (1, h_pad)).astype(jnp.float32)

    # --- GCNConv 1 + ReLU -------------------------------------------------
    h = _feature_transform(x_p, w1p, tile=tile, out_dtype=matmul_dtype)
    h = _aggregate(a_p, h, b1p, tile=tile, apply_relu=True,
                   out_dtype=matmul_dtype)
    # dropout (eval mode) -> identity

    # --- GCNConv 2 + ReLU -------------------------------------------------
    h = _feature_transform(h, w2p, tile=tile, out_dtype=matmul_dtype)
    h = _aggregate(a_p, h, b2p, tile=tile, apply_relu=True,
                   out_dtype=matmul_dtype)
    # dropout (eval mode) -> identity

    # --- GCNConv 3 (no activation) ------------------------------------------
    h = _feature_transform(h, w3p, tile=tile, out_dtype=matmul_dtype)
    out = _aggregate(a_p, h, b3p, tile=tile, apply_relu=False,
                     out_dtype=jnp.float32)

    return out[:n, :hidden]


# --------------------------------------------------------------------------
# Glue: adjacency normalization, params, reference
# --------------------------------------------------------------------------
def build_normalized_adjacency(edge_index, num_nodes):
    """Dense D^{-1/2}(A+I)D^{-1/2}; duplicate edges scatter-ADD (as in PyG)."""
    src, dst = edge_index
    adj = jnp.zeros((num_nodes, num_nodes), jnp.float32)
    adj = adj.at[dst, src].add(1.0)                 # aggregation over j -> i
    adj = adj + jnp.eye(num_nodes, dtype=jnp.float32)   # self loops
    deg = adj.sum(axis=1)
    dinv = jnp.where(deg > 0, jax.lax.rsqrt(deg), 0.0)
    return adj * dinv[:, None] * dinv[None, :]


def glorot(key, fan_in, fan_out):
    limit = jnp.sqrt(6.0 / (fan_in + fan_out))
    return jax.random.uniform(key, (fan_in, fan_out), jnp.float32, -limit, limit)


def init_params(key, in_channels, hidden_channels):
    k1, k2, k3 = jax.random.split(key, 3)
    w1 = glorot(k1, in_channels, hidden_channels)
    w2 = glorot(k2, hidden_channels, hidden_channels)
    w3 = glorot(k3, hidden_channels, hidden_channels)
    b1 = jnp.zeros((1, hidden_channels), jnp.float32)
    b2 = jnp.zeros((1, hidden_channels), jnp.float32)
    b3 = jnp.zeros((1, hidden_channels), jnp.float32)
    return ((w1, b1), (w2, b2), (w3, b3))


def reference_forward(a_hat, x, params):
    (w1, b1), (w2, b2), (w3, b3) = params
    hi = jax.lax.Precision.HIGHEST
    h = jnp.maximum(jnp.dot(a_hat, jnp.dot(x, w1, precision=hi), precision=hi) + b1, 0.0)
    h = jnp.maximum(jnp.dot(a_hat, jnp.dot(h, w2, precision=hi), precision=hi) + b2, 0.0)
    return jnp.dot(a_hat, jnp.dot(h, w3, precision=hi), precision=hi) + b3


if __name__ == "__main__":
    num_nodes = 300          # padded to 384 -> 3x3 aggregation grid with 128 tiles
    in_channels = 16
    hidden_channels = 32

    key = jax.random.PRNGKey(0)
    kx, ke, kp = jax.random.split(key, 3)

    # deterministic node features
    x = jax.random.normal(kx, (num_nodes, in_channels), jnp.float32)

    # deterministic undirected edge set (ring + random chords), edge_index [2, E]
    ring_src = jnp.arange(num_nodes, dtype=jnp.int32)
    ring_dst = (ring_src + 1) % num_nodes
    extra_src = jax.random.randint(ke, (64,), 0, num_nodes, jnp.int32)
    extra_dst = (extra_src + 7) % num_nodes
    src = jnp.concatenate([ring_src, ring_dst, extra_src, extra_dst])
    dst = jnp.concatenate([ring_dst, ring_src, extra_dst, extra_src])
    edge_index = jnp.stack([src, dst], axis=0)

    a_hat = build_normalized_adjacency(edge_index, num_nodes)
    params = init_params(kp, in_channels, hidden_channels)

    ref = reference_forward(a_hat, x, params)

    # exact f32 path
    out_f32 = jax.block_until_ready(
        gcn_net_forward(a_hat, x, params, matmul_dtype=jnp.float32))
    assert out_f32.shape == (num_nodes, hidden_channels)
    assert jnp.allclose(out_f32, ref, atol=1e-3, rtol=1e-3)

    # bf16-operand fast path (f32 accumulation) -- MXU-friendly on v5e/v6e/v7x
    out_bf16 = jax.block_until_ready(
        gcn_net_forward(a_hat, x, params, matmul_dtype=jnp.bfloat16))
    assert out_bf16.shape == (num_nodes, hidden_channels)
    assert jnp.allclose(out_bf16, ref, atol=1e-1, rtol=5e-2)

    print("KERNEL_OK")
</pallas_src>

<mosaic_0001>
module attributes {stable_mosaic.version = 11 : i64} {
  func.func @_feature_kernel(%arg0: i32, %arg1: memref<128x16xf32, #tpu.memory_space<vmem>>, %arg2: memref<16x128xf32, #tpu.memory_space<vmem>>, %arg3: memref<128x128xf32, #tpu.memory_space<vmem>>) attributes {dimension_semantics = [#tpu.dimension_semantics<parallel>], iteration_bounds = array<i64: 3>, scalar_prefetch = 0 : i64, scratch_operands = 0 : i64, tpu.core_type = #tpu.core_type<tc>, window_params = [{transform_indices = @transform_0, window_bounds = array<i64: 128, 16>}, {pipeline_mode = #tpu.pipeline_mode<synchronous>, transform_indices = @transform_1, window_bounds = array<i64: 16, 128>}, {transform_indices = @transform_2, window_bounds = array<i64: 128, 128>}]} {
    %c0 = arith.constant 0 : index
    %c0_0 = arith.constant 0 : index
    %0 = vector.load %arg1[%c0, %c0_0] : memref<128x16xf32, #tpu.memory_space<vmem>>, vector<128x16xf32>
    %c0_1 = arith.constant 0 : index
    %c0_2 = arith.constant 0 : index
    %1 = vector.load %arg2[%c0_1, %c0_2] : memref<16x128xf32, #tpu.memory_space<vmem>>, vector<16x128xf32>
    %cst = arith.constant dense<0.000000e+00> : vector<128x128xf32>
    %2 = tpu.matmul %0, %1, %cst {dimension_numbers = #tpu.dot_dimension_numbers<[1], [0], [0], [1], [0, 0, 1, 1], [], []>} : vector<128x16xf32>, vector<16x128xf32>, vector<128x128xf32> -> vector<128x128xf32>
    %c0_3 = arith.constant 0 : index
    %c0_4 = arith.constant 0 : index
    %3 = vector.load %arg3[%c0_3, %c0_4] : memref<128x128xf32, #tpu.memory_space<vmem>>, vector<128x128xf32>
    tpu.vector_store %arg3[%c0_3, %c0_4], %2 {strides = array<i32>} : memref<128x128xf32, #tpu.memory_space<vmem>>, vector<128x128xf32>,
    return
  }
  func.func @transform_0(%arg0: i32) -> (i32, i32) {
    %c0_i32 = arith.constant 0 : i32
    %c0_i32_0 = arith.constant 0 : i32
    return %arg0, %c0_i32 : i32, i32
  }
  func.func @transform_1(%arg0: i32) -> (i32, i32) {
    %c0_i32 = arith.constant 0 : i32
    %c0_i32_0 = arith.constant 0 : i32
    %c0_i32_1 = arith.constant 0 : i32
    return %c0_i32, %c0_i32_0 : i32, i32
  }
  func.func @transform_2(%arg0: i32) -> (i32, i32) {
    %c0_i32 = arith.constant 0 : i32
    %c0_i32_0 = arith.constant 0 : i32
    return %arg0, %c0_i32 : i32, i32
  }
}

</mosaic_0001>

<bundles_post_ra>
// kernel: tpu_custom_call.1
= control target key start
LH: loop header
LB: loop body
LE: loop exit
PB: predicated region body
PF: predicated region fallthrough
CT: control target
= control target key end

     0   :  { %7 = vsyncpa [#allocation3], 0  ;;  %s795_s0 = inlined_call_operand.vmem [shape: f32[384,16], index: 0, kind: input, shape index: {}]   ;;  %s796_s1 = inlined_call_operand.vmem [shape: f32[16,128], index: 1, kind: input, shape index: {}]   ;;  %s797_s2 = inlined_call_operand.hbm [shape: f32[384,128], index: 2, kind: output, shape index: {}]  }
   0x1   :  { %9 = vsyncpa [#allocation3 + $0x1], 0  ;;  %s649_s9 = smov 0   ;;  %s651_s10 = smov 0  }
   0x2   :  { %s653_s11 = smov 0   ;;  %s655_s12 = smov 0  }
   0x3 LB: > { %s670_s13 = sadd.s32 4294967295, %s629_s12   ;;  %s449_s14 = sadd.s32 4294967294, %s629_s12   ;;  %s629_s12 = sphi %s655_s12, %s803_s12   ;;  %s625_s11 = sphi %s653_s11, %s802_s11   ;;  %s621_s10 = sphi %s651_s10, %s801_s10   ;;  %s617_s9 = sphi %s649_s9, %s800_s9  }
   0x4   : > { %s674_s15 = sadd.s32 1, %s629_s12   ;;  %s69_s16 = sadd.s32 1, %s625_s11 }
   0x5   : > { %s66_s17 = ssub.s32 %s629_s12, %s674_s15  ;;  %p79_p0 = scmp.ne.s32.totalorder %s625_s11, %s621_s10 }
   0x6   : > { %p67_p1 = scmp.eq.s32.totalorder %s66_s17, 0  ;;  %p80_p2 = scmp.eq.s32.totalorder %s670_s13, 2 }
   0x7   : > { %p85_p3 = scmp.ne.s32.totalorder %s621_s10, %s617_s9  ;;  %p86_p4 = scmp.eq.s32.totalorder %s449_s14, 2 }
   0x8   : > { %s685_s18 = scalar_select %p67_p1, %s625_s11, %s69_s16  }
   0x9   : > { %p687_p5 = por %p80_p2, %p79_p0  ;;  %p691_p6 = por %p86_p4, %p85_p3 }
   0xa   : > { %p452_p7 = scmp.ge.s32.totalorder %s629_s12, 1  ;;  %p116_p8 = scmp.lt.s32.totalorder %s629_s12, 4 }
   0xc   : > { %p117_p9 = pnand %p452_p7, %p116_p8 }
   0xd   : > { %s454_s25 = sshll.u32 (!%p117_p9), %s670_s13, 4  ;;  %s135_s30 = sand.u32 (!%p117_p9), 1, %s621_s10  }
   0xe   : > { %120 = sbr.rel (%p117_p9) target bundleno = 246 (0xf6), region = 28  ;;  %p139_p10 = scmp.lt.s32.totalorder (!%p117_p9), %s454_s25, 47 }
   0xf   : > { %s453_s3 = sshll.u32 (!%p117_p9), %s135_s30, 7  ;;  %s477_s5 = sshll.u32 (!%p117_p9), %s670_s13, 11 }
  0x10   : > { %s726_s4 = scalar_lea.vmem (!%p117_p9), [#allocation2], %s453_s3  ;;  %s745_s14 = scalar_lea.hbm (!%p117_p9), %s797_s2, %s477_s5 }
  0x11   : > { %s387_s6 = sshll.u32 (!%p117_p9), %s726_s4, 4  ;;  %s755_s13 = scalar_lea.sflag (!%p117_p9), [#allocation3], %s135_s30  ;;  %s747_s6 = int_to_ptr.vmem [resolvable:$true] %s387_s6 }
  0x12   : > { %s569_s16 = scalar_lea.vmem (!%p117_p9), %s747_s6, 2048  ;;  %s631_s17 = smov (!%p117_p9), [#allocation2]  }
  0x13   : > { %v162_v0 = vld [vmem:[%s796_s1 + $0x8] sm:$0xff]  ;;  %v161_v1 = vld [vmem:[%s796_s1] sm:$0xff]  ;;  %s805_s25 = smov (!%p139_p10, %s454_s25), 47  ;;  %vm163_vm0 = vcmask 130048   ;;  %p570_p11 = scmp.ne.s32.totalorder %s747_s6, %s569_s16 }
  0x14   : > { %496 = vmatprep.subr.mxu0 %v162_v0  ;;  %524 = vmatprep.subr.mxu1 %v162_v0  ;;  %s455_s26 = sshll.u32 %s805_s25, 3  ;;  %s573_s21 = sshll.u32 %s631_s17, 4  ;;  %s574_s21 = int_to_ptr.vmem [resolvable:$false] %s573_s21 }
  0x15   : > { %497 = vmatpush3.msra.mxu0 %v162_v0  ;;  %526 = vmatpush3.msra.mxu1 %v162_v0  ;;  %s142_s29 = scalar_lea.vmem %s795_s0, %s455_s26  ;;  %p571_p12 = pnand %p570_p11, %p687_p5 }
  0x16   : > { %498 = vmatprep.subr.mxu0 %v161_v1  ;;  %525 = vmatprep.subr.mxu1 %v161_v1  ;;  %v145_v2 = vld [vmem:[%s142_s29] sm:$0xff]  ;;  %v146_v4 = vld [vmem:[%s142_s29 + $0x8] sm:$0xff]  ;;  %v147_v6 = vld [vmem:[%s142_s29 + $0x10] sm:$0xff]  ;;  %s575_s22 = scalar_lea.vmem %s574_s21, 4096  ;;  %p576_p0 = scmp.lt.s32.totalorder %s747_s6, %s574_s21 }
  0x17   : > { %499 = vmatpush3.msra.mxu0 %v161_v1  ;;  %527 = vmatpush3.msra.mxu1 %v161_v1  ;;  %v153_v3 = vld [vmem:[%s142_s29 + $0x40] sm:$0xff]  ;;  %v154_v5 = vld [vmem:[%s142_s29 + $0x48] sm:$0xff]  ;;  %v155_v7 = vld [vmem:[%s142_s29 + $0x50] sm:$0xff]  ;;  %p572_p13 = pneg %p571_p12  ;;  %p577_p1 = scmp.lt.s32.totalorder %s575_s22, %s569_s16 }
  0x18   : > { %500 = vmatprep.mubr.msk.f32.mxu0 %vm163_vm0, %v145_v2  ;;  %512 = vmatprep.mubr.msk.f32.mxu1 %vm163_vm0, %v153_v3  ;;  %v148_v8 = vld [vmem:[%s142_s29 + $0x18] sm:$0xff]  ;;  %v149_v10 = vld [vmem:[%s142_s29 + $0x20] sm:$0xff]  ;;  %v150_v12 = vld [vmem:[%s142_s29 + $0x28] sm:$0xff] }
  0x19   : > { %501 = vmatmul.mubr.msk.f32.vlgmr.msra.gmra.mxu0 %vm163_vm0, %v146_v4  ;;  %513 = vmatmul.mubr.msk.f32.vlgmr.msra.gmra.mxu1 %vm163_vm0, %v154_v5  ;;  %v156_v9 = vld [vmem:[%s142_s29 + $0x58] sm:$0xff]  ;;  %v157_v11 = vld [vmem:[%s142_s29 + $0x60] sm:$0xff]  ;;  %v158_v13 = vld [vmem:[%s142_s29 + $0x68] sm:$0xff]  ;;  %p578_p2 = por %p577_p1, %p576_p0 }
  0x1a   : > { %503 = vmatprep.mubr.msk.f32.mxu0 %vm163_vm0, %v147_v6  ;;  %515 = vmatprep.mubr.msk.f32.mxu1 %vm163_vm0, %v155_v7  ;;  %v151_v14 = vld [vmem:[%s142_s29 + $0x30] sm:$0xff]  ;;  %v152_v16 = vld [vmem:[%s142_s29 + $0x38] sm:$0xff] }
  0x1b   : > { %v159_v15 = vld [vmem:[%s142_s29 + $0x70] sm:$0xff]  ;;  %v160_v17 = vld [vmem:[%s142_s29 + $0x78] sm:$0xff]  ;;  %p579_p3 = pnand %p578_p2, %p572_p13 }
  0x1d   : > { %504 = vmatmul.mubr.msk.f32.gmra.mxu0 %vm163_vm0, %v148_v8  ;;  %516 = vmatmul.mubr.msk.f32.gmra.mxu1 %vm163_vm0, %v156_v9 }
  0x1e   : > { %506 = vmatprep.mubr.msk.f32.mxu0 %vm163_vm0, %v149_v10  ;;  %518 = vmatprep.mubr.msk.f32.mxu1 %vm163_vm0, %v157_v11 }
  0x21   : > { %507 = vmatmul.mubr.msk.f32.gmra.mxu0 %vm163_vm0, %v150_v12  ;;  %519 = vmatmul.mubr.msk.f32.gmra.mxu1 %vm163_vm0, %v158_v13 }
  0x22   : > { %509 = vmatprep.mubr.msk.f32.mxu0 %vm163_vm0, %v151_v14  ;;  %521 = vmatprep.mubr.msk.f32.mxu1 %vm163_vm0, %v159_v15 }
  0x25   : > { %510 = vmatmul.mubr.msk.f32.gmra.mxu0 %vm163_vm0, %v152_v16  ;;  %522 = vmatmul.mubr.msk.f32.gmra.mxu1 %vm163_vm0, %v160_v17 }
  0xd9   : > { %v502_v18 = vpop.f32.mrf.mxu0  ;;  %v514_v19 = vpop.f32.mrf.mxu1 }
  0xda   : > { %358 = vst [vmem:[%s726_s4 + $0x8] sm:$0xff] %v502_v18  ;;  %366 = vst [vmem:[%s726_s4 + $0x48] sm:$0xff] %v514_v19 }
  0xdb   : > { %v278_v20 = vpop.f32.mrf.mxu0  ;;  %v318_v21 = vpop.f32.mrf.mxu1 }
  0xdc   : > { %357 = vst [vmem:[%s726_s4] sm:$0xff] %v278_v20  ;;  %365 = vst [vmem:[%s726_s4 + $0x40] sm:$0xff] %v318_v21 }
  0xdd   : > { %v505_v22 = vpop.f32.mrf.mxu0  ;;  %v517_v23 = vpop.f32.mrf.mxu1 }
  0xde   : > { %360 = vst [vmem:[%s726_s4 + $0x18] sm:$0xff] %v505_v22  ;;  %368 = vst [vmem:[%s726_s4 + $0x58] sm:$0xff] %v517_v23 }
  0xdf   : > { %v288_v24 = vpop.f32.mrf.mxu0  ;;  %v328_v25 = vpop.f32.mrf.mxu1 }
  0xe0   : > { %359 = vst [vmem:[%s726_s4 + $0x10] sm:$0xff] %v288_v24  ;;  %367 = vst [vmem:[%s726_s4 + $0x50] sm:$0xff] %v328_v25 }
  0xe1   : > { %v508_v26 = vpop.f32.mrf.mxu0  ;;  %v520_v27 = vpop.f32.mrf.mxu1 }
  0xe2   : > { %362 = vst [vmem:[%s726_s4 + $0x28] sm:$0xff] %v508_v26  ;;  %370 = vst [vmem:[%s726_s4 + $0x68] sm:$0xff] %v520_v27 }
  0xe3   : > { %v298_v28 = vpop.f32.mrf.mxu0  ;;  %v338_v29 = vpop.f32.mrf.mxu1 }
  0xe4   : > { %361 = vst [vmem:[%s726_s4 + $0x20] sm:$0xff] %v298_v28  ;;  %369 = vst [vmem:[%s726_s4 + $0x60] sm:$0xff] %v338_v29 }
  0xe5   : > { %v511_v30 = vpop.f32.mrf.mxu0  ;;  %v523_v31 = vpop.f32.mrf.mxu1 }
  0xe6   : > { %364 = vst [vmem:[%s726_s4 + $0x38] sm:$0xff] %v511_v30  ;;  %372 = vst [vmem:[%s726_s4 + $0x78] sm:$0xff] %v523_v31 }
  0xe7   : > { %v308_v32 = vpop.f32.mrf.mxu0  ;;  %v348_v33 = vpop.f32.mrf.mxu1 }
  0xe8   : > { %363 = vst [vmem:[%s726_s4 + $0x30] sm:$0xff] %v308_v32  ;;  %371 = vst [vmem:[%s726_s4 + $0x70] sm:$0xff] %v348_v33 }
  0xe9   : > { %582 = shalt.err (!%p579_p3)
}
  0xea   : > { %s583_s23 = scalar_lea.hbm %s745_s14, 2048  ;;  %s587_s26 = scalar_lea.hbm %s797_s2, 6144 }
  0xeb   : > { %p584_p4 = scmp.ne.s32.totalorder %s745_s14, %s583_s23  ;;  %p588_p9 = scmp.lt.s32.totalorder %s745_s14, %s797_s2 }
  0xec   : > { %p589_p10 = scmp.lt.s32.totalorder %s587_s26, %s583_s23 }
  0xed   : > { %p585_p7 = pnand %p584_p4, %p687_p5 }
  0xee   : > { %p590_p11 = por %p589_p10, %p588_p9 }
  0xef   : > { %p586_p8 = pneg %p585_p7 }
  0xf1   : > { %p591_p12 = pnand %p590_p11, %p586_p8 }
  0xf3   : > { %594 = shalt.err (!%p591_p12)
}
  0xf4   : > { %s632_s29 = smov 128   ;;  %s633_s30 = smov 8  }
  0xf5   : > { %528 = dma.vmem_to_hbm [thread:$0]  (%p687_p5), %s747_s6, 2048, %s745_s14, %s755_s13, %s632_s29, %s632_s29, %s633_s30  }
  0xf6 PF: > { %p534_p13 = scmp.ge.s32.totalorder %s629_s12, 2  ;;  %s402_s3 = sand.u32 1, %s617_s9  }
  0xf7   : > { %s403_s4 = scalar_lea.sflag [#allocation3], %s402_s3 }
  0xf8   : > { %p531_p0 = pnand %p534_p13, %p691_p6 }
  0xfa   : > { %p532_p1 = pneg %p531_p0 }
  0xfc   : > { %612 = dma.done.wait (%p532_p1), %s403_s4, 2048  }
  0xfd   : > { %614 = vsyncadd (%p532_p1), %s403_s4, 4294965248  ;;  %p12_p2 = scmp.ge.s32.totalorder %s674_s15, 5   ;;  %s800_s9 = smov %s621_s10 }
  0xfe   : > { %s801_s10 = smov %s625_s11  ;;  %s802_s11 = smov %s685_s18 }
  0xff   : > { %s803_s12 = smov %s674_s15  ;;  %14 = sbr.rel (!%p12_p2) target bundleno = 3 (0x3), region = 63 }
 0x104   :  { %408 = vsyncpa [#allocation3], 1 }
 0x105   :  { %410 = vsyncpa [#allocation3 + $0x1], 1 }

</bundles_post_ra>
